<compile_context>
chip_gen: v7x
topology: tpu7x:2x2x1
jax: 0.10.0
libtpu: 0.0.40
codegen_flags: <defaults>
</compile_context>

<pallas_src>
import functools

import jax
import jax.numpy as jnp
from jax import lax
from jax.experimental import pallas as pl
from jax.experimental.pallas import tpu as pltpu

P = 30   # fixed by nn.Linear(30, 50) -> Linear(50, 50) -> Linear(50, 30)
H = 50
# Generous hard cap on the rebalance fixed point; the while_loop exits early
# (with ub=0.2 and sum(weights)==1 at most 5 elements can cap -> <=6 iters).
MAX_REBALANCE_ITERS = 40


def _subnetwork_kernel(scalar_ref,
                       prev_r_ref, state_ref, z_ref,
                       alpha_ref, a_t_ref, chol_t_ref,
                       w1_ref, w2_ref, w3_ref,
                       wealth_ref, r_ref):
    lb = scalar_ref[0]
    ub = scalar_ref[1]
    rf = scalar_ref[2]

    # --- multivariate-normal epsilon: eps = z @ chol(cov)^T  (in-kernel MXU pass)
    eps = jnp.dot(z_ref[...], chol_t_ref[...], preferred_element_type=jnp.float32)

    # --- AR(1) return update: R[b] = alpha + A @ prev_R[b] + eps[b]  (f32)
    R = (alpha_ref[...]
         + jnp.dot(prev_r_ref[...], a_t_ref[...], preferred_element_type=jnp.float32)
         + eps)
    r_ref[...] = R

    # --- subnetwork: (Linear -> Tanh) x3 + Softmax(dim=1), all f32
    h = jnp.tanh(jnp.dot(R, w1_ref[...], preferred_element_type=jnp.float32))
    h = jnp.tanh(jnp.dot(h, w2_ref[...], preferred_element_type=jnp.float32))
    h = jnp.tanh(jnp.dot(h, w3_ref[...], preferred_element_type=jnp.float32))
    m = jnp.max(h, axis=1, keepdims=True)
    e = jnp.exp(h - m)
    weights = e / jnp.sum(e, axis=1, keepdims=True)        # exact division

    # --- rebalance(): vectorized over batch with a per-row freeze mask.
    # The PyTorch per-row `while True` loop becomes an early-exit while_loop;
    # converged rows are frozen, reproducing the break-before-clamp semantics.
    old0 = weights
    new0 = jnp.clip(old0, lb, ub)
    done0 = jnp.zeros((weights.shape[0], 1), jnp.float32)   # 1.0 == row converged

    def not_finished(carry):
        it, _, _, done = carry
        return jnp.logical_and(it < MAX_REBALANCE_ITERS, jnp.min(done) < 0.5)

    def rebalance_step(carry):
        it, old, new, done = carry
        active = done < 0.5
        leftover = jnp.sum(old - new, axis=1, keepdims=True)
        mask = new != ub                      # clip yields bitwise-exact ub
        other = jnp.where(mask, new, 0.0)
        # Guard denom==0 (all-at-ub rows) against NaN; exact division otherwise.
        denom = jnp.maximum(jnp.sum(other, axis=1, keepdims=True), 1e-30)
        new_r = new + jnp.where(mask, leftover * other / denom, 0.0)
        # Convergence: no element strictly above ub  <=>  row max <= ub.
        row_done = jnp.max(new_r, axis=1, keepdims=True) <= ub
        new_next = jnp.where(row_done, new_r, jnp.clip(new_r, lb, ub))
        new = jnp.where(active, new_next, new)
        old = jnp.where(active, new_r, old)
        done = jnp.maximum(done, row_done.astype(jnp.float32))
        return (it + 1, old, new, done)

    _, _, output, _ = lax.while_loop(
        not_finished, rebalance_step, (jnp.int32(0), old0, new0, done0))

    # --- updated wealth: Rf * sum_p state[b] * w[b,p] * (1 + R[b,p])  (Rf hoisted)
    wealth_ref[...] = rf * jnp.sum(state_ref[...] * output * (1.0 + R),
                                   axis=1, keepdims=True)


@functools.lru_cache(maxsize=None)
def make_subnetwork_call(batch_size):
    """Build (and cache) the gridless pallas_call for a given batch size."""
    vmem = pl.BlockSpec(memory_space=pltpu.MemorySpace.VMEM)
    smem = pl.BlockSpec(memory_space=pltpu.MemorySpace.SMEM)
    # NOTE(v7x): at hundreds+ of rows switch to a batch-tiled grid with
    # dimension_semantics=("parallel",) so both TensorCores contribute; at the
    # small B used here the gridless single-shot call avoids pipeline overhead.
    return pl.pallas_call(
        _subnetwork_kernel,
        out_shape=(jax.ShapeDtypeStruct((batch_size, 1), jnp.float32),
                   jax.ShapeDtypeStruct((batch_size, P), jnp.float32)),
        in_specs=[smem] + [vmem] * 9,
        out_specs=(vmem, vmem),
    )


def prepare_params(alpha, A, cov, w1, w2, w3):
    """One-time prep (hoisted out of the forward path): pre-transpose weights
    and factor the covariance. Everything stays f32 (parity with torch)."""
    alpha = jnp.asarray(alpha, jnp.float32).reshape(1, P)
    a_t = jnp.asarray(A, jnp.float32).T                                # (P, P)
    chol_t = jnp.linalg.cholesky(jnp.asarray(cov, jnp.float32)).T      # (P, P)
    w1t = jnp.asarray(w1, jnp.float32).T                               # (P, H)
    w2t = jnp.asarray(w2, jnp.float32).T                               # (H, H)
    w3t = jnp.asarray(w3, jnp.float32).T                               # (H, P)
    return alpha, a_t, chol_t, w1t, w2t, w3t


@jax.jit
def subnetwork_forward(key, x1, x2, prepared, lb, ub, rf):
    """x1: state_variable (B,), x2: prev_R (B, P); prepared from prepare_params()."""
    alpha, a_t, chol_t, w1t, w2t, w3t = prepared
    B = x2.shape[0]
    # Standard-normal draw; Cholesky colouring happens inside the kernel.
    z = jax.random.normal(key, (B, P), jnp.float32)
    scalars = jnp.stack([jnp.asarray(lb, jnp.float32),
                         jnp.asarray(ub, jnp.float32),
                         jnp.asarray(rf, jnp.float32)])
    wealth2d, R_out = make_subnetwork_call(B)(
        scalars, x2, x1[:, None], z, alpha, a_t, chol_t, w1t, w2t, w3t)
    return wealth2d[:, 0], R_out


if __name__ == "__main__":
    B = 8
    lb, ub, rf = 0.0, 0.2, 1.03

    key = jax.random.PRNGKey(0)
    ks = jax.random.split(key, 9)

    # Deterministic parameter init (shapes from the module's __init__)
    alpha = 0.01 * jax.random.normal(ks[0], (1, P), jnp.float32)
    A = 0.1 * jax.random.normal(ks[1], (P, P), jnp.float32)
    w1 = jax.random.uniform(ks[2], (H, P), jnp.float32,
                            -1.0 / (P ** 0.5), 1.0 / (P ** 0.5))   # Linear(30,50)
    w2 = jax.random.uniform(ks[3], (H, H), jnp.float32,
                            -1.0 / (H ** 0.5), 1.0 / (H ** 0.5))   # Linear(50,50)
    w3 = jax.random.uniform(ks[4], (P, H), jnp.float32,
                            -1.0 / (H ** 0.5), 1.0 / (H ** 0.5))   # Linear(50,30)

    # Positive-definite covariance for the multivariate-normal epsilon.
    base = 0.05 * jax.random.normal(ks[5], (P, P), jnp.float32)
    cov = base @ base.T + 1e-3 * jnp.eye(P, dtype=jnp.float32)

    # Forward inputs
    x1 = jax.random.uniform(ks[6], (B,), jnp.float32, 0.5, 1.5)       # state_variable
    x2 = 0.05 * jax.random.normal(ks[7], (B, P), jnp.float32)         # prev_R

    # One-time weight prep (transpose + Cholesky), hoisted out of the forward path.
    prepared = prepare_params(alpha, A, cov, w1, w2, w3)

    updated_wealth, updated_return = subnetwork_forward(ks[8], x1, x2, prepared,
                                                        lb, ub, rf)
    jax.block_until_ready((updated_wealth, updated_return))

    assert updated_wealth.shape == (B,)
    assert updated_return.shape == (B, P)
    assert bool(jnp.all(jnp.isfinite(updated_wealth)))
    assert bool(jnp.all(jnp.isfinite(updated_return)))
    print("KERNEL_OK")
</pallas_src>

<mosaic_0001>
module attributes {stable_mosaic.version = 11 : i64} {
  func.func @_subnetwork_kernel(%arg0: memref<3xf32, #tpu.memory_space<smem>>, %arg1: memref<8x30xf32, #tpu.memory_space<vmem>>, %arg2: memref<8x1xf32, #tpu.memory_space<vmem>>, %arg3: memref<8x30xf32, #tpu.memory_space<vmem>>, %arg4: memref<1x30xf32, #tpu.memory_space<vmem>>, %arg5: memref<30x30xf32, #tpu.memory_space<vmem>>, %arg6: memref<30x30xf32, #tpu.memory_space<vmem>>, %arg7: memref<30x50xf32, #tpu.memory_space<vmem>>, %arg8: memref<50x50xf32, #tpu.memory_space<vmem>>, %arg9: memref<50x30xf32, #tpu.memory_space<vmem>>, %arg10: memref<8x1xf32, #tpu.memory_space<vmem>>, %arg11: memref<8x30xf32, #tpu.memory_space<vmem>>) attributes {dimension_semantics = [], scalar_prefetch = 0 : i64, scratch_operands = 0 : i64, tpu.core_type = #tpu.core_type<tc>} {
    %c0 = arith.constant 0 : index
    %0 = memref.load %arg0[%c0] : memref<3xf32, #tpu.memory_space<smem>>
    %c1 = arith.constant 1 : index
    %1 = memref.load %arg0[%c1] : memref<3xf32, #tpu.memory_space<smem>>
    %c2 = arith.constant 2 : index
    %2 = memref.load %arg0[%c2] : memref<3xf32, #tpu.memory_space<smem>>
    %c0_0 = arith.constant 0 : index
    %c0_1 = arith.constant 0 : index
    %3 = vector.load %arg3[%c0_0, %c0_1] : memref<8x30xf32, #tpu.memory_space<vmem>>, vector<8x30xf32>
    %c0_2 = arith.constant 0 : index
    %c0_3 = arith.constant 0 : index
    %4 = vector.load %arg6[%c0_2, %c0_3] : memref<30x30xf32, #tpu.memory_space<vmem>>, vector<30x30xf32>
    %cst = arith.constant dense<0.000000e+00> : vector<8x30xf32>
    %5 = tpu.matmul %3, %4, %cst {dimension_numbers = #tpu.dot_dimension_numbers<[1], [0], [0], [1], [0, 0, 1, 1], [], []>} : vector<8x30xf32>, vector<30x30xf32>, vector<8x30xf32> -> vector<8x30xf32>
    %c0_4 = arith.constant 0 : index
    %c0_5 = arith.constant 0 : index
    %6 = vector.load %arg4[%c0_4, %c0_5] : memref<1x30xf32, #tpu.memory_space<vmem>>, vector<1x30xf32>
    %c0_6 = arith.constant 0 : index
    %c0_7 = arith.constant 0 : index
    %7 = vector.load %arg1[%c0_6, %c0_7] : memref<8x30xf32, #tpu.memory_space<vmem>>, vector<8x30xf32>
    %c0_8 = arith.constant 0 : index
    %c0_9 = arith.constant 0 : index
    %8 = vector.load %arg5[%c0_8, %c0_9] : memref<30x30xf32, #tpu.memory_space<vmem>>, vector<30x30xf32>
    %cst_10 = arith.constant dense<0.000000e+00> : vector<8x30xf32>
    %9 = tpu.matmul %7, %8, %cst_10 {dimension_numbers = #tpu.dot_dimension_numbers<[1], [0], [0], [1], [0, 0, 1, 1], [], []>} : vector<8x30xf32>, vector<30x30xf32>, vector<8x30xf32> -> vector<8x30xf32>
    %10 = vector.broadcast %6 : vector<1x30xf32> to vector<8x30xf32>
    %11 = arith.addf %10, %9 : vector<8x30xf32>
    %12 = arith.addf %11, %5 : vector<8x30xf32>
    %c0_11 = arith.constant 0 : index
    %c0_12 = arith.constant 0 : index
    %13 = vector.load %arg11[%c0_11, %c0_12] : memref<8x30xf32, #tpu.memory_space<vmem>>, vector<8x30xf32>
    tpu.vector_store %arg11[%c0_11, %c0_12], %12 {strides = array<i32>} : memref<8x30xf32, #tpu.memory_space<vmem>>, vector<8x30xf32>,
    %c0_13 = arith.constant 0 : index
    %c0_14 = arith.constant 0 : index
    %14 = vector.load %arg7[%c0_13, %c0_14] : memref<30x50xf32, #tpu.memory_space<vmem>>, vector<30x50xf32>
    %cst_15 = arith.constant dense<0.000000e+00> : vector<8x50xf32>
    %15 = tpu.matmul %12, %14, %cst_15 {dimension_numbers = #tpu.dot_dimension_numbers<[1], [0], [0], [1], [0, 0, 1, 1], [], []>} : vector<8x30xf32>, vector<30x50xf32>, vector<8x50xf32> -> vector<8x50xf32>
    %16 = math.tanh %15 : vector<8x50xf32>
    %c0_16 = arith.constant 0 : index
    %c0_17 = arith.constant 0 : index
    %17 = vector.load %arg8[%c0_16, %c0_17] : memref<50x50xf32, #tpu.memory_space<vmem>>, vector<50x50xf32>
    %cst_18 = arith.constant dense<0.000000e+00> : vector<8x50xf32>
    %18 = tpu.matmul %16, %17, %cst_18 {dimension_numbers = #tpu.dot_dimension_numbers<[1], [0], [0], [1], [0, 0, 1, 1], [], []>} : vector<8x50xf32>, vector<50x50xf32>, vector<8x50xf32> -> vector<8x50xf32>
    %19 = math.tanh %18 : vector<8x50xf32>
    %c0_19 = arith.constant 0 : index
    %c0_20 = arith.constant 0 : index
    %20 = vector.load %arg9[%c0_19, %c0_20] : memref<50x30xf32, #tpu.memory_space<vmem>>, vector<50x30xf32>
    %cst_21 = arith.constant dense<0.000000e+00> : vector<8x30xf32>
    %21 = tpu.matmul %19, %20, %cst_21 {dimension_numbers = #tpu.dot_dimension_numbers<[1], [0], [0], [1], [0, 0, 1, 1], [], []>} : vector<8x50xf32>, vector<50x30xf32>, vector<8x30xf32> -> vector<8x30xf32>
    %22 = math.tanh %21 : vector<8x30xf32>
    %cst_22 = arith.constant dense<0xFF800000> : vector<8xf32>
    %23 = vector.multi_reduction <maximumf>, %22, %cst_22 [1] : vector<8x30xf32> to vector<8xf32>
    %24 = vector.shape_cast %23 : vector<8xf32> to vector<8x1xf32>
    %25 = vector.broadcast %24 : vector<8x1xf32> to vector<8x30xf32>
    %26 = arith.subf %22, %25 : vector<8x30xf32>
    %27 = math.exp %26 : vector<8x30xf32>
    %cst_23 = arith.constant dense<0.000000e+00> : vector<8xf32>
    %28 = vector.multi_reduction <add>, %27, %cst_23 [1] : vector<8x30xf32> to vector<8xf32>
    %29 = vector.shape_cast %28 : vector<8xf32> to vector<8x1xf32>
    %30 = vector.broadcast %29 : vector<8x1xf32> to vector<8x30xf32>
    %31 = arith.divf %27, %30 : vector<8x30xf32>
    %32 = vector.broadcast %0 : f32 to vector<8x30xf32>
    %33 = arith.maximumf %32, %31 : vector<8x30xf32>
    %34 = vector.broadcast %1 : f32 to vector<8x30xf32>
    %35 = arith.minimumf %34, %33 : vector<8x30xf32>
    %cst_24 = arith.constant 0.000000e+00 : f32
    %36 = vector.broadcast %cst_24 : f32 to vector<8x1xf32>
    %c0_i32 = arith.constant 0 : i32
    %37:4 = scf.while (%arg12 = %c0_i32, %arg13 = %31, %arg14 = %35, %arg15 = %36) : (i32, vector<8x30xf32>, vector<8x30xf32>, vector<8x1xf32>) -> (i32, vector<8x30xf32>, vector<8x30xf32>, vector<8x1xf32>) {
      %c40_i32 = arith.constant 40 : i32
      %49 = arith.cmpi slt, %arg12, %c40_i32 : i32
      %50 = vector.shape_cast %arg15 : vector<8x1xf32> to vector<1x8x1xf32>
      %cst_31 = arith.constant dense<0x7F800000> : vector<1xf32>
      %51 = vector.multi_reduction <minimumf>, %50, %cst_31 [1, 2] : vector<1x8x1xf32> to vector<1xf32>
      %52 = vector.shape_cast %51 : vector<1xf32> to vector<1x1x1xf32>
      %53 = vector.extract %52[0, 0, 0] : f32 from vector<1x1x1xf32>
      %cst_32 = arith.constant 5.000000e-01 : f32
      %54 = arith.cmpf olt, %53, %cst_32 : f32
      %55 = arith.andi %49, %54 : i1
      scf.condition(%55) %arg12, %arg13, %arg14, %arg15 : i32, vector<8x30xf32>, vector<8x30xf32>, vector<8x1xf32>
    } do {
    ^bb0(%arg12: i32, %arg13: vector<8x30xf32>, %arg14: vector<8x30xf32>, %arg15: vector<8x1xf32>):
      %cst_31 = arith.constant 5.000000e-01 : f32
      %49 = vector.broadcast %cst_31 : f32 to vector<8x1xf32>
      %50 = arith.cmpf olt, %arg15, %49 : vector<8x1xf32>
      %51 = arith.subf %arg13, %arg14 : vector<8x30xf32>
      %cst_32 = arith.constant dense<0.000000e+00> : vector<8xf32>
      %52 = vector.multi_reduction <add>, %51, %cst_32 [1] : vector<8x30xf32> to vector<8xf32>
      %53 = vector.shape_cast %52 : vector<8xf32> to vector<8x1xf32>
      %54 = vector.broadcast %1 : f32 to vector<8x30xf32>
      %55 = arith.cmpf one, %arg14, %54 : vector<8x30xf32>
      %cst_33 = arith.constant 0.000000e+00 : f32
      %56 = vector.broadcast %cst_33 : f32 to vector<8x30xf32>
      %57 = arith.select %55, %arg14, %56 : vector<8x30xi1>, vector<8x30xf32>
      %cst_34 = arith.constant dense<0.000000e+00> : vector<8xf32>
      %58 = vector.multi_reduction <add>, %57, %cst_34 [1] : vector<8x30xf32> to vector<8xf32>
      %59 = vector.shape_cast %58 : vector<8xf32> to vector<8x1xf32>
      %cst_35 = arith.constant 1.000000e-30 : f32
      %60 = vector.broadcast %cst_35 : f32 to vector<8x1xf32>
      %61 = arith.maximumf %59, %60 : vector<8x1xf32>
      %62 = vector.broadcast %53 : vector<8x1xf32> to vector<8x30xf32>
      %63 = arith.mulf %62, %57 : vector<8x30xf32>
      %64 = vector.broadcast %61 : vector<8x1xf32> to vector<8x30xf32>
      %65 = arith.divf %63, %64 : vector<8x30xf32>
      %cst_36 = arith.constant 0.000000e+00 : f32
      %66 = vector.broadcast %cst_36 : f32 to vector<8x30xf32>
      %67 = arith.select %55, %65, %66 : vector<8x30xi1>, vector<8x30xf32>
      %68 = arith.addf %arg14, %67 : vector<8x30xf32>
      %cst_37 = arith.constant dense<0xFF800000> : vector<8xf32>
      %69 = vector.multi_reduction <maximumf>, %68, %cst_37 [1] : vector<8x30xf32> to vector<8xf32>
      %70 = vector.shape_cast %69 : vector<8xf32> to vector<8x1xf32>
      %71 = vector.broadcast %1 : f32 to vector<8x1xf32>
      %72 = arith.cmpf ole, %70, %71 : vector<8x1xf32>
      %73 = vector.broadcast %0 : f32 to vector<8x30xf32>
      %74 = arith.maximumf %73, %68 : vector<8x30xf32>
      %75 = vector.broadcast %1 : f32 to vector<8x30xf32>
      %76 = arith.minimumf %75, %74 : vector<8x30xf32>
      %77 = vector.shape_cast %72 : vector<8x1xi1> to vector<8x1xi1>
      %78 = vector.broadcast %77 : vector<8x1xi1> to vector<8x30xi1>
      %79 = arith.select %78, %68, %76 : vector<8x30xi1>, vector<8x30xf32>
      %80 = vector.shape_cast %50 : vector<8x1xi1> to vector<8x1xi1>
      %81 = vector.broadcast %80 : vector<8x1xi1> to vector<8x30xi1>
      %82 = arith.select %81, %79, %arg14 : vector<8x30xi1>, vector<8x30xf32>
      %83 = vector.shape_cast %50 : vector<8x1xi1> to vector<8x1xi1>
      %84 = vector.broadcast %83 : vector<8x1xi1> to vector<8x30xi1>
      %85 = arith.select %84, %68, %arg13 : vector<8x30xi1>, vector<8x30xf32>
      %86 = arith.extui %72 : vector<8x1xi1> to vector<8x1xi32>
      %87 = arith.sitofp %86 : vector<8x1xi32> to vector<8x1xf32>
      %88 = arith.maximumf %arg15, %87 : vector<8x1xf32>
      %c1_i32 = arith.constant 1 : i32
      %89 = arith.addi %arg12, %c1_i32 : i32
      scf.yield %89, %85, %82, %88 : i32, vector<8x30xf32>, vector<8x30xf32>, vector<8x1xf32>
    }
    %c0_25 = arith.constant 0 : index
    %c0_26 = arith.constant 0 : index
    %38 = vector.load %arg2[%c0_25, %c0_26] : memref<8x1xf32, #tpu.memory_space<vmem>>, vector<8x1xf32>
    %39 = vector.broadcast %38 : vector<8x1xf32> to vector<8x30xf32>
    %40 = arith.mulf %39, %37#2 : vector<8x30xf32>
    %cst_27 = arith.constant 1.000000e+00 : f32
    %41 = vector.broadcast %cst_27 : f32 to vector<8x30xf32>
    %42 = arith.addf %41, %12 : vector<8x30xf32>
    %43 = arith.mulf %40, %42 : vector<8x30xf32>
    %cst_28 = arith.constant dense<0.000000e+00> : vector<8xf32>
    %44 = vector.multi_reduction <add>, %43, %cst_28 [1] : vector<8x30xf32> to vector<8xf32>
    %45 = vector.shape_cast %44 : vector<8xf32> to vector<8x1xf32>
    %46 = vector.broadcast %2 : f32 to vector<8x1xf32>
    %47 = arith.mulf %46, %45 : vector<8x1xf32>
    %c0_29 = arith.constant 0 : index
    %c0_30 = arith.constant 0 : index
    %48 = vector.load %arg10[%c0_29, %c0_30] : memref<8x1xf32, #tpu.memory_space<vmem>>, vector<8x1xf32>
    tpu.vector_store %arg10[%c0_29, %c0_30], %47 {strides = array<i32>} : memref<8x1xf32, #tpu.memory_space<vmem>>, vector<8x1xf32>,
    return
  }
}

</mosaic_0001>

<bundles_post_ra>
// kernel: subnetwork_forward.1
= control target key start
LH: loop header
LB: loop body
LE: loop exit
PB: predicated region body
PF: predicated region fallthrough
CT: control target
= control target key end

     0   :  { %17 = vsyncpa [#allocation5], 0  ;;  %s1203_s0 = inlined_call_operand.vmem [shape: f32[3], index: 0, kind: input, shape index: {}]   ;;  %s1204_s1 = inlined_call_operand.hbm [shape: f32[8,30], index: 1, kind: input, shape index: {}]   ;;  %s1205_s2 = inlined_call_operand.vmem [shape: f32[8,1], index: 2, kind: input, shape index: {}]   ;;  %s1206_s3 = inlined_call_operand.vmem [shape: f32[8,30], index: 3, kind: input, shape index: {}]   ;;  %s1207_s4 = inlined_call_operand.vmem [shape: f32[1,30], index: 4, kind: input, shape index: {}]   ;;  %s1208_s5 = inlined_call_operand.vmem [shape: f32[30,30], index: 5, kind: input, shape index: {}]   ;;  %s1209_s6 = inlined_call_operand.vmem [shape: f32[30,30], index: 6, kind: input, shape index: {}]   ;;  %s1210_s7 = inlined_call_operand.vmem [shape: f32[30,50], index: 7, kind: input, shape index: {}]   ;;  %s1211_s8 = inlined_call_operand.vmem [shape: f32[50,50], index: 8, kind: input, shape index: {}]   ;;  %s1212_s9 = inlined_call_operand.vmem [shape: f32[50,30], index: 9, kind: input, shape index: {}]   ;;  %s1213_s10 = inlined_call_operand.vmem [shape: f32[8,1], index: 10, kind: output, shape index: {0}]   ;;  %s1214_s11 = inlined_call_operand.hbm [shape: f32[8,30], index: 11, kind: output, shape index: {1}]  }
   0x1   :  { %18 = vsyncpa [#allocation3], 0 }
   0x2   :  { %19 = vsyncpa [#allocation4], 0  ;;  %s26_s19 = sshll.u32 %s1203_s0, 4  ;;  %s27_s19 = int_to_ptr.vmem [resolvable:$true] %s26_s19 }
   0x3   :  { %s837_s20 = scalar_lea.vmem %s27_s19, 16  ;;  %p842_p1 = scmp.lt.s32.totalorder %s27_s19, %s27_s19 }
   0x4   :  { %p838_p0 = scmp.ne.s32.totalorder %s27_s19, %s837_s20  ;;  %p843_p2 = scmp.lt.s32.totalorder %s837_s20, %s837_s20 }
   0x6   :  { %p844_p3 = por %p843_p2, %p842_p1 }
   0x8   :  { %p845_p4 = pnand %p844_p3, %p838_p0 }
   0xa   :  { %848 = shalt.err (!%p845_p4)
}
   0xb   :  { %s939_s21 = smov [#allocation2]   ;;  %s940_s22 = smov [#allocation6]  }
   0xc   :  { %29 = dma.vmem_to_smem %s27_s19, 16, %s939_s21, [#allocation5]  }
   0xd   :  { %s36_s23 = sshll.u32 %s940_s22, 4  ;;  %s849_s26 = scalar_lea.hbm %s1204_s1, 128  ;;  %s37_s23 = int_to_ptr.vmem [resolvable:$true] %s36_s23 }
   0xe   :  { %p850_p5 = scmp.ne.s32.totalorder %s1204_s1, %s849_s26  ;;  %p853_p6 = scmp.lt.u32.totalorder %s849_s26, %s1204_s1 }
  0x10   :  { %p855_p7 = pnand %p853_p6, %p850_p5 }
  0x12   :  { %858 = shalt.err (!%p855_p7)
}
  0x13   :  { %s859_s30 = scalar_lea.vmem %s37_s23, 128  ;;  %p864_p9 = scmp.lt.s32.totalorder %s37_s23, %s37_s23 }
  0x14   :  { %p860_p8 = scmp.ne.s32.totalorder %s37_s23, %s859_s30  ;;  %p865_p10 = scmp.lt.s32.totalorder %s859_s30, %s859_s30 }
  0x16   :  { %p866_p11 = por %p865_p10, %p864_p9 }
  0x18   :  { %p867_p12 = pnand %p866_p11, %p860_p8 }
  0x1a   :  { %870 = shalt.err (!%p867_p12)
}
  0x1b   :  { %39 = dma.hbm_to_vmem [thread:$0]  %s1204_s1, 128, %s37_s23, [#allocation3]  }
  0x1c   :  { %913 = dma.done.wait [#allocation5], 16  }
  0x1d   :  { %914 = vsyncadd [#allocation5], 4294967280 }
  0x1e   :  { %915 = dma.done.wait [#allocation3], 128  }
  0x1f   :  { %916 = vsyncadd [#allocation3], 4294967168 }
  0x20   :  { %62 = sfence }
  0x21   :  { %s1024_s14 = sld [smem:[#allocation2 + $0x2]]  ;;  %v67_v0 = vld [vmem:[%s1209_s6] sm:$0xff]  ;;  %v68_v1 = vld [vmem:[%s1209_s6 + $0x8] sm:$0xff]  ;;  %v69_v2 = vld [vmem:[%s1209_s6 + $0x10] sm:$0xff]  ;;  %v941_v3 = vmov 0.0|0.0   ;;  %vm75_vm0 = vcmask 1045504  }
  0x22   :  { %728 = vmatprep.subr.bf16.mxu0 %v941_v3  ;;  %v729_v4 = vpack.c.bf16 %v68_v1, %v67_v0  ;;  %v70_v5 = vld [vmem:[%s1209_s6 + $0x18] sm:$0x3f]  ;;  %742 = vmatprep.subr.bf16.mxu1 %v941_v3  ;;  %vm942_vm1 = vmmov 1   ;;  %vm943_vm3 = vmmov 0   ;;  %v944_v8 = vmov 0.0   ;;  %v151_v9 = vld [vmem:[%s1208_s5] sm:$0xff] }
  0x23   :  { %v732_v6 = vpack.c.bf16 %v70_v5, %v69_v2  ;;  %vm1040_vm2 = vmpackc.low %vm75_vm0, %vm942_vm1  ;;  %669 = vmatprep.mubr.msk.f32.mxu0 %vm943_vm3, %v944_v8  ;;  %v152_v10 = vld [vmem:[%s1208_s5 + $0x8] sm:$0xff]  ;;  %v240_v11 = vld [vmem:[%s1210_s7] sm:$0xff]  ;;  %691 = vmatprep.mubr.msk.f32.mxu1 %vm943_vm3, %v944_v8  ;;  %vm71_vm4 = vcmask 244736   ;;  %vm332_vm5 = vcmask 1041408   ;;  %vm328_vm6 = vcmask 408576   ;;  %s615_s21 = sld [smem:[#allocation2 + $0x1]] }
  0x24   :  { %730 = vmatpush3.bf16.msra.mxu0 %v729_v4  ;;  %v241_v12 = vld [vmem:[%s1210_s7 + $0x8] sm:$0xff]  ;;  %v66_v14 = vld [vmem:[%s1206_s3] sm:$0xff]  ;;  %v736_v15 = vpack.c.bf16 %v152_v10, %v151_v9  ;;  %v153_v16 = vld [vmem:[%s1208_s5 + $0x10] sm:$0xff]  ;;  %v945_v5 = vmov 0.0  }
  0x25   :  { %731 = vmatprep.subr.bf16.mxu0 %v941_v3  ;;  %v743_v13 = vpack.c.bf16 %v241_v12, %v240_v11  ;;  %v154_v17 = vld [vmem:[%s1208_s5 + $0x18] sm:$0x3f]  ;;  %v150_v19 = vld [vmem:[#allocation6] sm:$0xff]  ;;  %v242_v20 = vld [vmem:[%s1210_s7 + $0x10] sm:$0xff] }
  0x26   :  { %v739_v18 = vpack.c.bf16 %v154_v17, %v153_v16  ;;  %v243_v21 = vld [vmem:[%s1210_s7 + $0x18] sm:$0x3f]  ;;  %v321_v23 = vld [vmem:[%s1211_s8] sm:$0xff]  ;;  %v322_v24 = vld [vmem:[%s1211_s8 + $0x8] sm:$0xff] }
  0x27   :  { %744 = vmatpush3.bf16.msra.mxu1 %v743_v13  ;;  %v746_v22 = vpack.c.bf16 %v243_v21, %v242_v20  ;;  %v621_v25 = vld [vmem:[%s1207_s4] ss:$0 sm:$0xff]  ;;  %v750_v27 = vpack.c.bf16 %v322_v24, %v321_v23  ;;  %v323_v30 = vld [vmem:[%s1211_s8 + $0x10] sm:$0xff]  ;;  %v324_v31 = vld [vmem:[%s1211_s8 + $0x18] sm:$0xff] }
  0x28   :  { %734 = vmatpush3.bf16.msk.msra.mxu0 %vm1040_vm2, %v732_v6  ;;  %745 = vmatprep.subr.bf16.mxu1 %v941_v3  ;;  %v753_v32 = vpack.c.bf16 %v324_v31, %v323_v30  ;;  %v325_v33 = vld [vmem:[%s1211_s8 + $0x20] sm:$0xff]  ;;  %v326_v34 = vld [vmem:[%s1211_s8 + $0x28] sm:$0xff]  ;;  %v327_v36 = vld [vmem:[%s1211_s8 + $0x30] sm:$0x3]  ;;  %v597_v6 = vrot.slane %v945_v5, 4 }
  0x29   :  { %735 = vmatprep.subr.bf16.mxu0 %v941_v3  ;;  %v756_v35 = vpack.c.bf16 %v326_v34, %v325_v33  ;;  %v407_v37 = vld [vmem:[%s1212_s9] sm:$0xff]  ;;  %v408_v38 = vld [vmem:[%s1212_s9 + $0x8] sm:$0xff]  ;;  %v409_v43 = vld [vmem:[%s1212_s9 + $0x10] sm:$0xff]  ;;  %v1161_v2 = vstv %s615_s21 }
  0x2a   :  { %v759_v39 = vpack.c.bf16 %v408_v38, %v407_v37  ;;  %v410_v44 = vld [vmem:[%s1212_s9 + $0x18] sm:$0xff]  ;;  %v411_v46 = vld [vmem:[%s1212_s9 + $0x20] sm:$0xff]  ;;  %v412_v47 = vld [vmem:[%s1212_s9 + $0x28] sm:$0xff]  ;;  %v598_v7 = vmin.f32 %v597_v6, 0.0 }
  0x2b   :  { %670 = vmatmul.mubr.msk.f32.vlgmr.msra.gmra.mrb[0].mxu0 %vm71_vm4, %v66_v14  ;;  %748 = vmatpush3.bf16.msk.msra.mxu1 %vm1040_vm2, %v746_v22  ;;  %v762_v45 = vpack.c.bf16 %v410_v44, %v409_v43  ;;  %v765_v48 = vpack.c.bf16 %v412_v47, %v411_v46  ;;  %v413_v49 = vld [vmem:[%s1212_s9 + $0x30] sm:$0x3]  ;;  %s1158_s9 = sld [smem:[#allocation2]] }
  0x2c   :  { %737 = vmatpush3.bf16.msra.mxu0 %v736_v15  ;;  %680 = vmatprep.mubr.msk.f32.mxu0 %vm943_vm3, %v944_v8 }
  0x2d   :  { %738 = vmatprep.subr.bf16.mxu0 %v941_v3  ;;  %749 = vmatprep.subr.bf16.mxu1 %v941_v3 }
  0x30   :  { %741 = vmatpush3.bf16.msk.msra.mxu0 %vm1040_vm2, %v739_v18 }
  0x31   :  { %758 = vmatprep.subr.bf16.mxu0 %v941_v3  ;;  %v502_v0 = vstv %s1158_s9 }
  0x33   :  { %681 = vmatmul.mubr.msk.f32.vlgmr.msra.gmra.mrb[0].mxu0 %vm71_vm4, %v150_v19 }
  0x34   :  { %725 = vmatprep.mubr.msk.f32.mxu0 %vm943_vm3, %v944_v8  ;;  %760 = vmatpush3.bf16.msra.mxu0 %v759_v39 }
  0x35   :  { %761 = vmatprep.subr.bf16.mxu0 %v941_v3 }
  0x38   :  { %763 = vmatpush3.bf16.msra.mxu0 %v762_v45 }
  0x39   :  { %764 = vmatprep.subr.bf16.mxu0 %v941_v3 }
  0x3c   :  { %766 = vmatpush3.bf16.msra.mxu0 %v765_v48 }
  0x3d   :  { %723 = vmatprep.subr.mxu0 %v944_v8 }
  0x40   :  { %724 = vmatpush3.msk.msra.mxu0 %vm332_vm5, %v413_v49 }
 0x106   :  { %v227_v26 = vpop.f32.mrb[0].mxu0 }
 0x107   :  { %v1102_v28 = vadd.f32 %v621_v25, %v227_v26  ;;  %v682_v29 = vpop.f32.mrb[1].mxu0 }
 0x109   :  { %239 = vst.msk [vmem:[#allocation7] sm:$0xff] %vm71_vm4, %v1102_v28  ;;  %692 = vmatmul.mubr.msk.f32.vlgmr.msra.gmra.mrb[0].mxu1 %vm71_vm4, %v1102_v28 }
 0x10a   :  { %751 = vmatpush3.bf16.msra.mxu1 %v750_v27  ;;  %708 = vmatprep.mubr.msk.f32.mxu1 %vm943_vm3, %v944_v8 }
 0x10b   :  { %752 = vmatprep.subr.bf16.mxu1 %v941_v3 }
 0x10e   :  { %754 = vmatpush3.bf16.msra.mxu1 %v753_v32 }
 0x10f   :  { %755 = vmatprep.subr.bf16.mxu1 %v941_v3 }
 0x112   :  { %757 = vmatpush3.bf16.msra.mxu1 %v756_v35 }
 0x113   :  { %706 = vmatprep.subr.mxu1 %v944_v8  ;;  %v599_v8 = vrot.slane %v598_v7, 2 }
 0x115   :  { %v600_v9 = vmin.f32 %v598_v7, %v599_v8 }
 0x116   :  { %707 = vmatpush3.msk.msra.mxu1 %vm332_vm5, %v327_v36 }
 0x117   :  { %v601_v10 = vrot.slane %v600_v9, 1 }
 0x119   :  { %v602_v11 = vmin.f32 %v600_v9, %v601_v10 }
 0x11b   :  { %770 = vpush %v602_v11 }
 0x14c   :  { %s771_s22 = spop %770 }
 0x14d   :  { %p604_p13 = scmp.lt.f32.partialorder %s771_s22, 0.5 }
 0x14e   :  { %v919_v13 = vmov (%p604_p13), 0.0   ;;  %s1166_s7 = smov (%p604_p13), 0  }
 0x1dc   :  { %v316_v40 = vpop.f32.mrb[0].mxu1 }
 0x1dd   :  { %824 = vtanh.f32 %v316_v40  ;;  %v693_v41 = vpop.f32.mrb[1].mxu1 }
 0x1e7   :  { %v825_v42 = vpop.eup %824 }
 0x1e8   :  { %709 = vmatmul.mubr.msk.f32.vlgmr.msra.gmra.mrb[2].mxu1 %vm328_vm6, %v825_v42 }
 0x2bb   :  { %v402_v50 = vpop.f32.mrb[2].mxu1 }
 0x2bc   :  { %826 = vtanh.f32 %v402_v50  ;;  %v710_v51 = vpop.f32.mrb[3].mxu1 }
 0x2c6   :  { %v827_v52 = vpop.eup %826 }
 0x2c7   :  { %726 = vmatmul.mubr.msk.f32.vlgmr.msra.gmra.mrb[2].mxu0 %vm328_vm6, %v827_v52 }
 0x39a   :  { %v486_v53 = vpop.f32.mrb[2].mxu0 }
 0x39b   :  { %828 = vtanh.f32 %v486_v53  ;;  %v727_v54 = vpop.f32.mrb[3].mxu0 }
 0x3a5   :  { %v829_v55 = vpop.eup %828 }
 0x3a6   :  { %v491_v56 = vsel %vm71_vm4, %v829_v55, -inf }
 0x3a7   :  { %492 = vmax.xlane.f32.xlu0 %v491_v56 }
 0x434   :  { %v493_v57 = vpop.xlane.xlu0 %492 }
 0x435   :  { %v494_v58 = vsub.f32 %v829_v55, %v493_v57 }
 0x437   :  { %v495_v59 = vmul.f32 1.442695, %v494_v58 }
 0x439   :  { %830 = vpow2.f32 %v495_v59 }
 0x443   :  { %v831_v60 = vpop.eup %830 }
 0x444   :  { %v497_v61 = vsel %vm71_vm4, %v831_v60, 0.0 }
 0x445   :  { %498 = vadd.xlane.f32.xlu0 %v497_v61 }
 0x4d2   :  { %v499_v62 = vpop.xlane.xlu0 %498 }
 0x4d3   :  { %832 = vrcp.f32 %v499_v62 }
 0x4dd   :  { %v833_v63 = vpop.eup %832 }
 0x4de   :  { %v501_v1 = vmul.f32 %v833_v63, %v831_v60   ;;  %606 = sbr.rel (!%p604_p13) target bundleno = 1636 (0x664), region = 77 }
 0x4e0   :  { %v503_v3 = vmax.f32 %v502_v0, %v501_v1  ;;  %v927_v15 = vmov (%p604_p13), %v501_v1  }
 0x4e2   :  { %v505_v4 = vmin.f32 %v1161_v2, %v503_v3  }
 0x4e4   :  { %v935_v12 = vmov %v505_v4   ;;  %v923_v14 = vmov (%p604_p13), %v505_v4  }
 0x4e5 LB: > { %vm529_vm7 = vcmp.ne.f32.partialorder %v925_v14, %v1161_v2  ;;  %v525_v16 = vsub.f32 %v929_v15, %v925_v14  ;;  %vm524_vm8 = vcmp.lt.f32.partialorder %v921_v13, 0.5  ;;  %s555_s7 = sadd.s32 1, %s933_s7   ;;  %v946_v34 = vmov 0.0   ;;  %s933_s7 = sphi %s1166_s7, %s555_s7   ;;  %v929_v15 = vphi %v927_v15, %v552_v15   ;;  %v925_v14 = vphi %v923_v14, %v924_v14   ;;  %v921_v13 = vphi %v919_v13, %v554_v13  }
 0x4e6   : > { %v530_v17 = vsel %vm529_vm7, %v925_v14, 0.0  ;;  %p511_p0 = scmp.lt.s32.totalorder %s555_s7, 40 }
 0x4e7   : > { %v531_v18 = vsel %vm71_vm4, %v530_v17, 0.0  ;;  %v526_v19 = vsel %vm71_vm4, %v525_v16, 0.0 }
 0x4e8   : > { %532 = vadd.xlane.f32.xlu0 %v531_v18 }
 0x4ec   : > { %527 = vadd.xlane.f32.xlu0 %v526_v19 }
 0x575   : > { %v533_v20 = vpop.xlane.xlu0 %532 }
 0x576   : > { %v534_v21 = vmax.f32 %v533_v20, 1e-30 }
 0x578   : > { %834 = vrcp.f32 %v534_v21 }
 0x579   : > { %v528_v22 = vpop.xlane.xlu0 %527 }
 0x57a   : > { %v535_v23 = vmul.f32 %v530_v17, %v528_v22 }
 0x582   : > { %v835_v24 = vpop.eup %834 }
 0x583   : > { %v537_v25 = vmul.f32 %v835_v24, %v535_v23 }
 0x585   : > { %v538_v26 = vsel %vm529_vm7, %v537_v25, 0.0 }
 0x586   : > { %v539_v27 = vadd.f32 %v925_v14, %v538_v26 }
 0x588   : > { %v540_v29 = vsel %vm71_vm4, %v539_v27, -inf  ;;  %v552_v15 = vsel %vm524_vm8, %v539_v27, %v929_v15   ;;  %v544_v30 = vmax.f32 %v502_v0, %v539_v27 }
 0x589   : > { %541 = vmax.xlane.f32.xlu1 %v540_v29 }
 0x58a   : > { %v545_v31 = vmin.f32 %v1161_v2, %v544_v30 }
 0x616   : > { %v542_v32 = vpop.xlane.xlu1 %541 }
 0x617   : > { %vm543_vm9 = vcmp.le.f32.partialorder %v542_v32, %v1161_v2 }
 0x618   : > { %v548_v33 = vsel %vm543_vm9, %v539_v27, %v545_v31  ;;  %v629_v35 = vsel %vm543_vm9, 1.0, %v946_v34 }
 0x619   : > { %v551_v36 = vsel %vm524_vm8, %v548_v33, %v925_v14   ;;  %v554_v13 = vmax.f32 %v921_v13, %v629_v35  }
 0x61a   : > { %v924_v14 = vmov %v551_v36  }
 0x61b   : > { %v512_v37 = vrot.slane %v554_v13, 4 }
 0x61d   : > { %v513_v38 = vmin.f32 %v554_v13, %v512_v37 }
 0x61f   : > { %v514_v39 = vrot.slane %v513_v38, 2 }
 0x621   : > { %v515_v40 = vmin.f32 %v513_v38, %v514_v39 }
 0x623   : > { %v516_v41 = vrot.slane %v515_v40, 1 }
 0x625   : > { %v517_v42 = vmin.f32 %v515_v40, %v516_v41 }
 0x627   : > { %772 = vpush %v517_v42 }
 0x658   : > { %s773_s23 = spop %772 }
 0x659   : > { %p519_p1 = scmp.lt.f32.partialorder %s773_s23, 0.5 }
 0x65b   : > { %p520_p2 = pnand %p519_p1, %p511_p0 }
 0x65c   :  { %v936_v12 = vmov (%p520_p2), %v551_v36  }
 0x65d   :  { %523 = sbr.rel (!%p520_p2) target bundleno = 1253 (0x4e5), region = 83 }
 0x664 PF:  { %v556_v43 = vld [vmem:[%s1205_s2] sm:$0xff]  ;;  %v947_v44 = vmov 0   ;;  %v563_v45 = vadd.f32 1.0, %v1102_v28  ;;  %s948_s24 = smov [#allocation7]   ;;  %v937_v12 = vphi %v935_v12, %v936_v12  }
 0x665   :  { %836 = vset.pattern.permute.xlu0 %v947_v44  ;;  %s580_s25 = sshll.u32 %s948_s24, 4  ;;  %s581_s25 = int_to_ptr.vmem [resolvable:$true] %s580_s25 }
 0x666   :  { %559 = vperm.xlu0 %836, %v556_v43   ;;  %s871_s26 = scalar_lea.vmem %s581_s25, 128  ;;  %p876_p4 = scmp.lt.s32.totalorder %s581_s25, %s581_s25 }
 0x667   :  { %p872_p3 = scmp.ne.s32.totalorder %s581_s25, %s871_s26  ;;  %p877_p5 = scmp.lt.s32.totalorder %s871_s26, %s871_s26 }
 0x669   :  { %p878_p6 = por %p877_p5, %p876_p4 }
 0x66b   :  { %p879_p7 = pnand %p878_p6, %p872_p3 }
 0x6e5   :  { %v560_v46 = vpop.permute.xlu0 %559 }
 0x6e6   :  { %v562_v47 = vmul.f32 %v937_v12, %v560_v46 }
 0x6e8   :  { %v564_v48 = vmul.f32 %v563_v45, %v562_v47 }
 0x6ea   :  { %v565_v49 = vsel %vm71_vm4, %v564_v48, 0.0 }
 0x6eb   :  { %566 = vadd.xlane.f32.xlu0 %v565_v49 }
 0x6ec   :  { %882 = shalt.err (!%p879_p7)
}
 0x6ed   :  { %s883_s28 = scalar_lea.hbm %s1214_s11, 128 }
 0x6ee   :  { %p884_p8 = scmp.ne.s32.totalorder %s1214_s11, %s883_s28  ;;  %p887_p9 = scmp.lt.u32.totalorder %s883_s28, %s1214_s11 }
 0x6f0   :  { %p889_p10 = pnand %p887_p9, %p884_p8 }
 0x6f2   :  { %892 = shalt.err (!%p889_p10)
}
 0x6f3   :  { %583 = dma.vmem_to_hbm [thread:$0]  %s581_s25, 128, %s1214_s11, [#allocation4]   ;;  %v568_v28 = vstv %s1024_s14  ;;  %vm570_vm10 = vcmask 7168  }
 0x778   :  { %v567_v50 = vpop.xlane.xlu0 %566 }
 0x779   :  { %v569_v51 = vmul.f32 %v568_v28, %v567_v50 }
 0x77b   :  { %571 = vst.msk [vmem:[%s1213_s10] sm:$0xff] %vm570_vm10, %v569_v51 }
 0x77c   :  { %917 = dma.done.wait [#allocation4], 128  }
 0x77d   :  { %918 = vsyncadd [#allocation4], 4294967168 }
 0x77e   :  { %589 = vsyncpa [#allocation3], 1 }
 0x77f   :  { %590 = vsyncpa [#allocation4], 1 }
 0x780   :  { %591 = vsyncpa [#allocation5], 1 }

</bundles_post_ra>
